<compile_context>
chip_gen: v6e
topology: v6e:2x2x1
jax: 0.10.0
libtpu: 0.0.40
codegen_flags: <defaults>
</compile_context>

<pallas_src>
import math

import jax
import jax.numpy as jnp
from jax.experimental import pallas as pl
from jax.experimental.pallas import tpu as pltpu


_LANE_CANDIDATES = (1024, 512, 256, 128)   # lane-dense output => unmasked vst
_SMALL_FALLBACK_BYTES = 256 << 10          # below this per input, plain jnp wins
_MIN_BLOCK_ROWS = 32                       # 32-row tiles: clean packing for bf16/int8
_MIN_GRID_STEPS = 4                        # keep the pipeline double-buffered
_MIN_TILE_BYTES = 1 << 20                  # DMA-efficiency knee (~1 MiB per buffer)
_VMEM_HEADROOM = 4 << 20                   # leave room for compiler scratch


def _vmem_plan():
    """Generation-aware (vmem_limit_bytes, tile budget, max inputs per call)."""
    try:
        cap = int(pltpu.get_tpu_info().vmem_capacity_bytes)
    except Exception:
        cap = 0
    if cap >= (96 << 20):        # v5e / v6e: 128 MiB physical per TensorCore
        vmem_limit = 64 << 20
    else:                        # v7x (64 MiB per TC) or unknown: conservative
        vmem_limit = 32 << 20
    budget = vmem_limit - _VMEM_HEADROOM
    # Double-buffered tiles: 2 * (n_inputs + 1 output) * tile_bytes <= budget.
    max_inputs = max(1, budget // (2 * _MIN_TILE_BYTES) - 1)
    return vmem_limit, budget, max_inputs


def _choose_block_rows(rows, per_row_bytes, budget):
    """Largest 32-aligned row tile fitting the budget, aiming for >=4 grid steps."""
    if rows <= _MIN_BLOCK_ROWS:
        return rows                                   # full-dim block (always legal)
    max_rows = budget // (2 * per_row_bytes)          # 2x: double-buffering
    max_rows = max(_MIN_BLOCK_ROWS, (max_rows // _MIN_BLOCK_ROWS) * _MIN_BLOCK_ROWS)
    target = (rows // _MIN_GRID_STEPS) // _MIN_BLOCK_ROWS * _MIN_BLOCK_ROWS
    target = max(_MIN_BLOCK_ROWS, target)
    return min(max_rows, target)


def _pallas_sum(xs2d, block_rows, lane, out_dtype, acc_dtype, vmem_limit, alias_first):
    """One pallas_call: elementwise sum of xs2d (a list of (rows, lane) arrays)."""
    n = len(xs2d)
    rows = xs2d[0].shape[0]
    grid = (pl.cdiv(rows, block_rows),)   # ragged last block handled by Pallas

    def kernel(*refs):
        out_ref = refs[-1]
        in_refs = refs[:-1]
        acc = in_refs[0][...].astype(acc_dtype)
        for r in in_refs[1:]:
            acc = acc + r[...].astype(acc_dtype)
        out_ref[...] = acc.astype(out_ref.dtype)

    spec = pl.BlockSpec((block_rows, lane), lambda i: (i, 0))
    total_elems = rows * lane
    bytes_accessed = sum(int(x.size) * x.dtype.itemsize for x in xs2d)
    bytes_accessed += total_elems * jnp.dtype(out_dtype).itemsize
    cost = pl.CostEstimate(
        flops=max(n - 1, 0) * total_elems,
        transcendentals=0,
        bytes_accessed=bytes_accessed,
    )

    kwargs = {}
    if alias_first:
        kwargs["input_output_aliases"] = {0: 0}   # reuse the carried partial's buffer

    return pl.pallas_call(
        kernel,
        out_shape=jax.ShapeDtypeStruct((rows, lane), out_dtype),
        grid=grid,
        in_specs=[spec] * n,
        out_specs=spec,
        compiler_params=pltpu.CompilerParams(
            dimension_semantics=("parallel",),    # v7x: shard rows across both TCs
            vmem_limit_bytes=vmem_limit,
        ),
        cost_estimate=cost,
        **kwargs,
    )(*xs2d)


def _jnp_sum(xs):
    out = xs[0]
    for x in xs[1:]:
        out = out + x
    return out


def aggregation_layer(xs, *, force_pallas=False):
    """Elementwise sum of a list of same-shaped arrays (PyTorch AggregationLayer)."""
    assert len(xs) >= 1
    shape = xs[0].shape
    dtype = xs[0].dtype
    for x in xs:
        assert x.shape == shape and x.dtype == dtype

    total = int(math.prod(shape)) if len(shape) > 0 else 1
    itemsize = jnp.dtype(dtype).itemsize

    # Tiny tensors: a fused XLA add is already optimal; skip kernel-launch cost.
    if not force_pallas and total * itemsize < _SMALL_FALLBACK_BYTES:
        return _jnp_sum(xs)

    # Lane-dense flatten: widest lane width (multiple of 128) dividing the
    # element count; otherwise run the kernel on the 128-aligned prefix and
    # sum the <128-element tail with plain jnp (no whole-array pad copies).
    lane = next((l for l in _LANE_CANDIDATES if total % l == 0), 128)
    aligned = (total // lane) * lane
    if aligned == 0:
        return _jnp_sum(xs)
    rows = aligned // lane

    flats = [x.reshape(-1) for x in xs]
    if aligned == total:
        xs2d = [f.reshape(rows, lane) for f in flats]
        tail = None
    else:
        xs2d = [f[:aligned].reshape(rows, lane) for f in flats]
        tail = _jnp_sum([f[aligned:] for f in flats])

    # Narrow floats accumulate in f32 (inside the kernel and across chunks).
    acc_f32 = jnp.issubdtype(dtype, jnp.floating) and itemsize < 4
    acc_dtype = jnp.float32 if acc_f32 else dtype

    vmem_limit, budget, max_inputs_per_call = _vmem_plan()

    # Almost always a single pallas_call; extremely long input lists are chunked
    # with the partial carried forward in acc_dtype (no precision loss).
    partial = None
    i = 0
    n = len(xs2d)
    while i < n:
        room = max(1, max_inputs_per_call - (1 if partial is not None else 0))
        chunk = xs2d[i:i + room]
        i += len(chunk)
        args = ([partial] if partial is not None else []) + chunk
        is_last = i >= n
        out_dtype = dtype if is_last else acc_dtype
        per_row_bytes = lane * (sum(jnp.dtype(a.dtype).itemsize for a in args)
                                + jnp.dtype(out_dtype).itemsize)
        block_rows = _choose_block_rows(rows, per_row_bytes, budget)
        alias_first = (partial is not None
                       and partial.dtype == jnp.dtype(out_dtype))
        partial = _pallas_sum(args, block_rows, lane, out_dtype, acc_dtype,
                              vmem_limit, alias_first)

    out_flat = partial.reshape(-1)
    if tail is not None:
        out_flat = jnp.concatenate([out_flat, tail.astype(dtype)], axis=0)
    return out_flat.reshape(shape)


if __name__ == "__main__":
    def ref_sum(arrs):
        out = jnp.zeros_like(arrs[0])
        for a in arrs:
            out = out + a
        return out

    keys = jax.random.split(jax.random.PRNGKey(0), 10)

    # 1) Spec-sized demo (2, 4, 16, 16) x3, f32 — forced through the Pallas path.
    xs1 = [jax.random.normal(keys[j], (2, 4, 16, 16), dtype=jnp.float32)
           for j in range(3)]
    out1 = jax.block_until_ready(aggregation_layer(xs1, force_pallas=True))
    assert out1.shape == xs1[0].shape and out1.dtype == xs1[0].dtype
    assert jnp.allclose(out1, ref_sum(xs1), atol=1e-5, rtol=1e-5)

    # 2) Larger f32 case: multi-step grid, double-buffering, ragged last block.
    xs2 = [jax.random.normal(keys[3 + j], (10, 3, 64, 128), dtype=jnp.float32)
           for j in range(4)]
    out2 = jax.block_until_ready(aggregation_layer(xs2))
    assert jnp.allclose(out2, ref_sum(xs2), atol=1e-4, rtol=1e-5)

    # 3) bf16 with a non-128-divisible element count (lane-tail path + f32 acc).
    xs3 = [jax.random.normal(keys[7 + j], (3, 5, 7, 11), dtype=jnp.bfloat16)
           for j in range(3)]
    out3 = jax.block_until_ready(aggregation_layer(xs3, force_pallas=True))
    ref3 = ref_sum([x.astype(jnp.float32) for x in xs3])
    assert out3.shape == xs3[0].shape and out3.dtype == jnp.bfloat16
    assert jnp.allclose(out3.astype(jnp.float32), ref3, atol=5e-2, rtol=5e-2)

    print("KERNEL_OK")
</pallas_src>

<mosaic_0001>
module attributes {stable_mosaic.version = 11 : i64} {
  func.func @kernel(%arg0: i32, %arg1: memref<2x1024xf32, #tpu.memory_space<vmem>>, %arg2: memref<2x1024xf32, #tpu.memory_space<vmem>>, %arg3: memref<2x1024xf32, #tpu.memory_space<vmem>>, %arg4: memref<2x1024xf32, #tpu.memory_space<vmem>>) attributes {dimension_semantics = [#tpu.dimension_semantics<parallel>], iteration_bounds = array<i64: 1>, scalar_prefetch = 0 : i64, scratch_operands = 0 : i64, tpu.core_type = #tpu.core_type<tc>, window_params = [{transform_indices = @transform_0, window_bounds = array<i64: 2, 1024>}, {transform_indices = @transform_1, window_bounds = array<i64: 2, 1024>}, {transform_indices = @transform_2, window_bounds = array<i64: 2, 1024>}, {transform_indices = @transform_3, window_bounds = array<i64: 2, 1024>}]} {
    %c0 = arith.constant 0 : index
    %c0_0 = arith.constant 0 : index
    %0 = vector.load %arg1[%c0, %c0_0] : memref<2x1024xf32, #tpu.memory_space<vmem>>, vector<2x1024xf32>
    %c0_1 = arith.constant 0 : index
    %c0_2 = arith.constant 0 : index
    %1 = vector.load %arg2[%c0_1, %c0_2] : memref<2x1024xf32, #tpu.memory_space<vmem>>, vector<2x1024xf32>
    %2 = arith.addf %0, %1 : vector<2x1024xf32>
    %c0_3 = arith.constant 0 : index
    %c0_4 = arith.constant 0 : index
    %3 = vector.load %arg3[%c0_3, %c0_4] : memref<2x1024xf32, #tpu.memory_space<vmem>>, vector<2x1024xf32>
    %4 = arith.addf %2, %3 : vector<2x1024xf32>
    %c0_5 = arith.constant 0 : index
    %c0_6 = arith.constant 0 : index
    %5 = vector.load %arg4[%c0_5, %c0_6] : memref<2x1024xf32, #tpu.memory_space<vmem>>, vector<2x1024xf32>
    tpu.vector_store %arg4[%c0_5, %c0_6], %4 {strides = array<i32>} : memref<2x1024xf32, #tpu.memory_space<vmem>>, vector<2x1024xf32>,
    return
  }
  func.func @transform_0(%arg0: i32) -> (i32, i32) {
    %c0_i32 = arith.constant 0 : i32
    %c0_i32_0 = arith.constant 0 : i32
    return %arg0, %c0_i32 : i32, i32
  }
  func.func @transform_1(%arg0: i32) -> (i32, i32) {
    %c0_i32 = arith.constant 0 : i32
    %c0_i32_0 = arith.constant 0 : i32
    return %arg0, %c0_i32 : i32, i32
  }
  func.func @transform_2(%arg0: i32) -> (i32, i32) {
    %c0_i32 = arith.constant 0 : i32
    %c0_i32_0 = arith.constant 0 : i32
    return %arg0, %c0_i32 : i32, i32
  }
  func.func @transform_3(%arg0: i32) -> (i32, i32) {
    %c0_i32 = arith.constant 0 : i32
    %c0_i32_0 = arith.constant 0 : i32
    return %arg0, %c0_i32 : i32, i32
  }
}

</mosaic_0001>

<bundles_post_ra>
// kernel: tpu_custom_call.1
= control target key start
LH: loop header
LB: loop body
LE: loop exit
PB: predicated region body
PF: predicated region fallthrough
CT: control target
= control target key end

     0   :  { %8 = vsyncpa [#allocation3], 0  ;;  %s204_s0 = inlined_call_operand.hbm [shape: f32[2,1024], index: 0, kind: input, shape index: {}]   ;;  %s205_s1 = inlined_call_operand.hbm [shape: f32[2,1024], index: 1, kind: input, shape index: {}]   ;;  %s206_s2 = inlined_call_operand.hbm [shape: f32[2,1024], index: 2, kind: input, shape index: {}]   ;;  %s207_s3 = inlined_call_operand.hbm [shape: f32[2,1024], index: 3, kind: output, shape index: {}]  }
   0x1   :  { %9 = vsyncpa [#allocation6], 0 }
   0x2   :  { %10 = vsyncpa [#allocation4], 0  ;;  %s168_s12 = smov [#allocation5]   ;;  %s169_s14 = smov [#allocation2]  }
   0x3   :  { %s27_s13 = sshll.u32 %s168_s12, 4  ;;  %s17_s15 = sshll.u32 %s169_s14, 4  ;;  %s28_s13 = int_to_ptr.vmem [resolvable:$true] %s27_s13  ;;  %s18_s15 = int_to_ptr.vmem [resolvable:$true] %s17_s15 }
   0x4   :  { %s90_s16 = scalar_lea.vmem %s28_s13, 256  ;;  %p95_p1 = scmp.lt.s32.totalorder %s28_s13, %s28_s13 }
   0x5   :  { %p91_p0 = scmp.ne.s32.totalorder %s28_s13, %s90_s16  ;;  %p96_p2 = scmp.lt.s32.totalorder %s90_s16, %s90_s16 }
   0x7   :  { %p97_p3 = por %p96_p2, %p95_p1 }
   0x9   :  { %p98_p4 = pnand %p97_p3, %p91_p0 }
   0xb   :  { %101 = shalt.err (!%p98_p4)
}
   0xc   :  { %30 = dma.hbm_to_vmem [thread:$0]  %s205_s1, 256, %s28_s13, [#allocation6]  }
   0xd   :  { %s110_s19 = scalar_lea.vmem %s18_s15, 256  ;;  %p115_p6 = scmp.lt.s32.totalorder %s18_s15, %s18_s15 }
   0xe   :  { %p111_p5 = scmp.ne.s32.totalorder %s18_s15, %s110_s19  ;;  %p116_p7 = scmp.lt.s32.totalorder %s110_s19, %s110_s19 }
  0x10   :  { %p117_p8 = por %p116_p7, %p115_p6 }
  0x12   :  { %p118_p9 = pnand %p117_p8, %p111_p5 }
  0x14   :  { %121 = shalt.err (!%p118_p9)
}
  0x15   :  { %20 = dma.hbm_to_vmem [thread:$0]  %s204_s0, 256, %s18_s15, [#allocation3]  }
  0x16   :  { %s170_s22 = smov [#allocation7]  }
  0x17   :  { %s37_s23 = sshll.u32 %s170_s22, 4  ;;  %s38_s23 = int_to_ptr.vmem [resolvable:$true] %s37_s23 }
  0x18   :  { %s130_s24 = scalar_lea.vmem %s38_s23, 256  ;;  %p135_p11 = scmp.lt.s32.totalorder %s38_s23, %s38_s23 }
  0x19   :  { %p131_p10 = scmp.ne.s32.totalorder %s38_s23, %s130_s24  ;;  %p136_p12 = scmp.lt.s32.totalorder %s130_s24, %s130_s24 }
  0x1b   :  { %p137_p13 = por %p136_p12, %p135_p11 }
  0x1d   :  { %p138_p0 = pnand %p137_p13, %p131_p10 }
  0x1f   :  { %141 = shalt.err (!%p138_p0)
}
  0x20   :  { %40 = dma.hbm_to_vmem [thread:$0]  %s206_s2, 256, %s38_s23, [#allocation6]  }
  0x21   :  { %162 = dma.done.wait [#allocation3], 256  }
  0x22   :  { %163 = vsyncadd [#allocation3], 4294967040 }
  0x23   :  { %164 = dma.done.wait [#allocation6], 512  }
  0x24   :  { %165 = vsyncadd [#allocation6], 4294966784  ;;  %v50_v0 = vld [vmem:[#allocation2] sm:$0xff]  ;;  %v52_v1 = vld [vmem:[#allocation5] sm:$0xff]  ;;  %s171_s0 = smov [#allocation8]  }
  0x25   :  { %v56_v2 = vld [vmem:[#allocation7] sm:$0xff]  ;;  %v54_v3 = vadd.f32 %v52_v1, %v50_v0  ;;  %v51_v4 = vld [vmem:[#allocation2 + $0x8] sm:$0xff]  ;;  %v53_v5 = vld [vmem:[#allocation5 + $0x8] sm:$0xff]  ;;  %s68_s26 = sshll.u32 %s171_s0, 4  ;;  %s69_s26 = int_to_ptr.vmem [resolvable:$true] %s68_s26 }
  0x26   :  { %v57_v6 = vld [vmem:[#allocation7 + $0x8] sm:$0xff]  ;;  %v55_v7 = vadd.f32 %v53_v5, %v51_v4  ;;  %s142_s2 = scalar_lea.vmem %s69_s26, 256  ;;  %p147_p2 = scmp.lt.s32.totalorder %s69_s26, %s69_s26 }
  0x27   :  { %v58_v8 = vadd.f32 %v56_v2, %v54_v3  ;;  %p143_p1 = scmp.ne.s32.totalorder %s69_s26, %s142_s2  ;;  %p148_p3 = scmp.lt.s32.totalorder %s142_s2, %s142_s2 }
  0x28   :  { %v59_v9 = vadd.f32 %v57_v6, %v55_v7 }
  0x29   :  { %60 = vst [vmem:[#allocation8] sm:$0xff] %v58_v8  ;;  %p149_p4 = por %p148_p3, %p147_p2 }
  0x2a   :  { %61 = vst [vmem:[#allocation8 + $0x8] sm:$0xff] %v59_v9 }
  0x2b   :  { %p150_p5 = pnand %p149_p4, %p143_p1 }
  0x2d   :  { %153 = shalt.err (!%p150_p5)
}
  0x2e   :  { %71 = dma.vmem_to_hbm [thread:$0]  %s69_s26, 256, %s207_s3, [#allocation4]  }
  0x2f   :  { %166 = dma.done.wait [#allocation4], 256  }
  0x30   :  { %167 = vsyncadd [#allocation4], 4294967040 }
  0x31   :  { %75 = vsyncpa [#allocation3], 1 }
  0x32   :  { %76 = vsyncpa [#allocation6], 1 }
  0x33   :  { %77 = vsyncpa [#allocation4], 1 }

</bundles_post_ra>
